<compile_context>
chip_gen: v5e
topology: v5e:2x2
jax: 0.10.0
libtpu: 0.0.40
codegen_flags: <defaults>
</compile_context>

<pallas_src>
import jax
import jax.numpy as jnp
from jax import lax
from jax.experimental import pallas as pl
from jax.experimental.pallas import tpu as pltpu

EPS = 1e-12  # torch F.normalize default eps


def _round_up(x, m):
    return (x + m - 1) // m * m


def _vmem_budget_bytes():
    """Per-generation VMEM budget with headroom for Mosaic internal scratch."""
    cap = 64 * 1024 * 1024  # conservative fallback (v7x per-TensorCore physical VMEM)
    try:
        info = pltpu.get_tpu_info()
        cap = int(getattr(info, "vmem_capacity_bytes", cap))
    except Exception:
        pass
    # Leave >=16 MiB headroom; allow up to 96 MiB on 128-MiB chips (v5e/v6e).
    return max(min(cap - 16 * 1024 * 1024, 96 * 1024 * 1024), 32 * 1024 * 1024)


# ---------------- kernels ----------------

def _fused_kernel(x_ref, w_ref, b_ref, o_ref):
    """Single K step: matmul + bias + row L2 normalize. Grid: (Bp//tm,)."""
    y = jnp.dot(x_ref[...].astype(jnp.bfloat16), w_ref[...],
                preferred_element_type=jnp.float32) + b_ref[...]
    sumsq = jnp.sum(y * y, axis=-1, keepdims=True)       # padded cols are exactly 0
    o_ref[...] = y * lax.rsqrt(jnp.maximum(sumsq, EPS * EPS))


def _tiled_kernel(x_ref, w_ref, b_ref, o_ref):
    """Grid: (Bp//tm, Kp//tk). Accumulate x@w over K into the resident o_ref block,
    bias folded into k==0; normalize rows on the final K step."""
    k = pl.program_id(1)
    partial = jnp.dot(x_ref[...].astype(jnp.bfloat16), w_ref[...],
                      preferred_element_type=jnp.float32)

    @pl.when(k == 0)
    def _():
        o_ref[...] = partial + b_ref[...]

    @pl.when(k > 0)
    def _():
        o_ref[...] += partial

    @pl.when(k == pl.num_programs(1) - 1)
    def _():
        y = o_ref[...]
        sumsq = jnp.sum(y * y, axis=-1, keepdims=True)
        o_ref[...] = y * lax.rsqrt(jnp.maximum(sumsq, EPS * EPS))


# ---------------- model wrapper ----------------

def make_model_with_normalize(weight, bias, *, tm_max=256):
    """Build ModelWithNormalize(Linear(K, D)). weight: (K, D), bias: (D,).
    Padded bf16 weight / f32 bias are prepared ONCE here (hoisted out of the call path)."""
    K, D = weight.shape
    Dp = _round_up(D, 128)
    budget = _vmem_budget_bytes()

    def _vmem_bytes(tm_, tk_):
        return (2 * tm_ * tk_ * 4        # x f32 block (double-buffered)
                + 2 * tk_ * Dp * 2       # bf16 weight block (double-buffered)
                + 2 * tm_ * Dp * 4       # resident f32 output block
                + 2 * Dp * 4)            # bias

    # Pick the K tile: prefer a single K step (no accumulation) when it fits the budget.
    Kp_full = _round_up(K, 128)
    tk = 256
    for cand in (Kp_full, 2048, 1024, 512, 256):
        if cand <= Kp_full and cand % 128 == 0 and _vmem_bytes(tm_max, cand) <= budget:
            tk = cand
            break
    Kp = Kp_full if tk == Kp_full else _round_up(K, tk)

    # One-time parameter preparation (skip padding when already aligned).
    w_bf16 = weight.astype(jnp.bfloat16)
    if (K, D) != (Kp, Dp):
        w_p = jnp.zeros((Kp, Dp), jnp.bfloat16).at[:K, :D].set(w_bf16)
    else:
        w_p = w_bf16
    b_f32 = bias.astype(jnp.float32)
    if D != Dp:
        b_p = jnp.zeros((1, Dp), jnp.float32).at[0, :D].set(b_f32)
    else:
        b_p = b_f32.reshape(1, Dp)
    w_p = jax.device_put(w_p)
    b_p = jax.device_put(b_p)

    def forward(samples):
        B = samples.shape[0]
        x = samples.reshape(B, -1)                       # glue reshape in plain JAX
        assert x.shape[1] == K

        # Row tile: cap by batch; give the 'parallel' B axis >=2 blocks when B allows (v7x).
        tm = min(tm_max, _round_up(B, 8))
        if B >= 16 and -(-B // tm) < 2:
            tm = _round_up(-(-B // 2), 8)
        Bp = _round_up(B, tm)

        # Pad x only when needed; stays f32 (in-kernel bf16 cast).
        if (B, K) != (Bp, Kp):
            x_in = jnp.zeros((Bp, Kp), jnp.float32).at[:B, :K].set(x.astype(jnp.float32))
        else:
            x_in = x.astype(jnp.float32)

        n_k = Kp // tk
        if n_k == 1:
            grid = (Bp // tm,)
            kernel = _fused_kernel
            in_specs = [
                pl.BlockSpec((tm, Kp), lambda i: (i, 0)),    # x tile (f32)
                pl.BlockSpec((Kp, Dp), lambda i: (0, 0)),    # whole bf16 weight, lane-dense D
                pl.BlockSpec((1, Dp), lambda i: (0, 0)),     # bias (f32)
            ]
            out_spec = pl.BlockSpec((tm, Dp), lambda i: (i, 0))
            dims = ("parallel",)
        else:
            grid = (Bp // tm, n_k)
            kernel = _tiled_kernel
            in_specs = [
                pl.BlockSpec((tm, tk), lambda i, k: (i, k)),   # x tile (f32)
                pl.BlockSpec((tk, Dp), lambda i, k: (k, 0)),   # bf16 weight tile, lane-dense D
                pl.BlockSpec((1, Dp), lambda i, k: (0, 0)),    # bias (f32)
            ]
            out_spec = pl.BlockSpec((tm, Dp), lambda i, k: (i, 0))  # resident along K
            dims = ("parallel", "arbitrary")

        out = pl.pallas_call(
            kernel,
            out_shape=jax.ShapeDtypeStruct((Bp, Dp), jnp.float32),
            grid_spec=pltpu.PrefetchScalarGridSpec(
                num_scalar_prefetch=0,
                grid=grid,
                in_specs=in_specs,
                out_specs=out_spec,
            ),
            compiler_params=pltpu.CompilerParams(
                dimension_semantics=dims,
                vmem_limit_bytes=budget,
            ),
        )(x_in, w_p, b_p)

        if (B, D) != (Bp, Dp):
            out = out[:B, :D]
        return out

    return forward


# ---------------- references ----------------

def _reference_f32(samples, weight, bias):
    x = samples.reshape(samples.shape[0], -1).astype(jnp.float32)
    y = x @ weight.astype(jnp.float32) + bias
    n = jnp.sqrt(jnp.sum(y * y, axis=1, keepdims=True))
    return y / jnp.maximum(n, EPS)


def _reference_bf16(samples, weight, bias):
    # Same quantization choice as the kernel (bf16 matmul inputs, f32 accumulate/normalize).
    x = samples.reshape(samples.shape[0], -1).astype(jnp.bfloat16)
    y = jnp.dot(x, weight.astype(jnp.bfloat16), preferred_element_type=jnp.float32) + bias
    n = jnp.sqrt(jnp.sum(y * y, axis=1, keepdims=True))
    return y / jnp.maximum(n, EPS)


if __name__ == "__main__":
    B, C, H, W, D = 2, 4, 16, 16, 32
    K = C * H * W

    key = jax.random.PRNGKey(0)
    k_x, k_w, k_b = jax.random.split(key, 3)
    samples = jax.random.normal(k_x, (B, C, H, W), dtype=jnp.float32)
    weight = jax.random.normal(k_w, (K, D), dtype=jnp.float32) * (1.0 / jnp.sqrt(K))
    bias = jax.random.normal(k_b, (D,), dtype=jnp.float32) * 0.01

    model = make_model_with_normalize(weight, bias)   # params padded/cast once here
    out = model(samples)
    out = jax.block_until_ready(out)
    assert out.shape == (B, D)

    # Tight check vs a reference using the same bf16-matmul precision choice.
    ref_bf16 = _reference_bf16(samples, weight, bias)
    assert jnp.allclose(out, ref_bf16, atol=1e-4, rtol=1e-4), "mismatch vs bf16 reference"

    # Sanity check vs full-f32 reference (loose: bf16 matmul inputs).
    ref_f32 = _reference_f32(samples, weight, bias)
    assert jnp.allclose(out, ref_f32, atol=5e-2, rtol=5e-2), "mismatch vs f32 reference"

    # Rows should be unit-norm.
    assert jnp.allclose(jnp.linalg.norm(out, axis=1), 1.0, atol=1e-4)

    print("KERNEL_OK")
</pallas_src>

<mosaic_0001>
module attributes {stable_mosaic.version = 11 : i64} {
  func.func @_fused_kernel(%arg0: i32, %arg1: memref<8x1024xf32, #tpu.memory_space<vmem>>, %arg2: memref<1024x128xbf16, #tpu.memory_space<vmem>>, %arg3: memref<1x128xf32, #tpu.memory_space<vmem>>, %arg4: memref<8x128xf32, #tpu.memory_space<vmem>>) attributes {dimension_semantics = [#tpu.dimension_semantics<parallel>], iteration_bounds = array<i64: 1>, scalar_prefetch = 0 : i64, scratch_operands = 0 : i64, tpu.core_type = #tpu.core_type<tc>, window_params = [{transform_indices = @transform_0, window_bounds = array<i64: 8, 1024>}, {pipeline_mode = #tpu.pipeline_mode<synchronous>, transform_indices = @transform_1, window_bounds = array<i64: 1024, 128>}, {pipeline_mode = #tpu.pipeline_mode<synchronous>, transform_indices = @transform_2, window_bounds = array<i64: 1, 128>}, {transform_indices = @transform_3, window_bounds = array<i64: 8, 128>}]} {
    %c0 = arith.constant 0 : index
    %c0_0 = arith.constant 0 : index
    %0 = vector.load %arg1[%c0, %c0_0] : memref<8x1024xf32, #tpu.memory_space<vmem>>, vector<8x1024xf32>
    %1 = arith.truncf %0 : vector<8x1024xf32> to vector<8x1024xbf16>
    %c0_1 = arith.constant 0 : index
    %c0_2 = arith.constant 0 : index
    %2 = vector.load %arg2[%c0_1, %c0_2] : memref<1024x128xbf16, #tpu.memory_space<vmem>>, vector<1024x128xbf16>
    %cst = arith.constant dense<0.000000e+00> : vector<8x128xf32>
    %3 = tpu.matmul %1, %2, %cst {dimension_numbers = #tpu.dot_dimension_numbers<[1], [0], [0], [1], [0, 0, 1, 1], [], []>} : vector<8x1024xbf16>, vector<1024x128xbf16>, vector<8x128xf32> -> vector<8x128xf32>
    %c0_3 = arith.constant 0 : index
    %c0_4 = arith.constant 0 : index
    %4 = vector.load %arg3[%c0_3, %c0_4] : memref<1x128xf32, #tpu.memory_space<vmem>>, vector<1x128xf32>
    %5 = vector.broadcast %4 : vector<1x128xf32> to vector<8x128xf32>
    %6 = arith.addf %3, %5 : vector<8x128xf32>
    %7 = arith.mulf %6, %6 : vector<8x128xf32>
    %cst_5 = arith.constant dense<0.000000e+00> : vector<8xf32>
    %8 = vector.multi_reduction <add>, %7, %cst_5 [1] : vector<8x128xf32> to vector<8xf32>
    %9 = vector.shape_cast %8 : vector<8xf32> to vector<8x1xf32>
    %cst_6 = arith.constant 1.000000e-24 : f32
    %10 = vector.broadcast %cst_6 : f32 to vector<8x1xf32>
    %11 = arith.maximumf %9, %10 : vector<8x1xf32>
    %12 = math.rsqrt %11 : vector<8x1xf32>
    %13 = vector.broadcast %12 : vector<8x1xf32> to vector<8x128xf32>
    %14 = arith.mulf %6, %13 : vector<8x128xf32>
    %c0_7 = arith.constant 0 : index
    %c0_8 = arith.constant 0 : index
    %15 = vector.load %arg4[%c0_7, %c0_8] : memref<8x128xf32, #tpu.memory_space<vmem>>, vector<8x128xf32>
    tpu.vector_store %arg4[%c0_7, %c0_8], %14 {strides = array<i32>} : memref<8x128xf32, #tpu.memory_space<vmem>>, vector<8x128xf32>,
    return
  }
  func.func @transform_0(%arg0: i32) -> (i32, i32) {
    %c0_i32 = arith.constant 0 : i32
    %c0_i32_0 = arith.constant 0 : i32
    return %arg0, %c0_i32 : i32, i32
  }
  func.func @transform_1(%arg0: i32) -> (i32, i32) {
    %c0_i32 = arith.constant 0 : i32
    %c0_i32_0 = arith.constant 0 : i32
    %c0_i32_1 = arith.constant 0 : i32
    return %c0_i32, %c0_i32_0 : i32, i32
  }
  func.func @transform_2(%arg0: i32) -> (i32, i32) {
    %c0_i32 = arith.constant 0 : i32
    %c0_i32_0 = arith.constant 0 : i32
    %c0_i32_1 = arith.constant 0 : i32
    return %c0_i32, %c0_i32_0 : i32, i32
  }
  func.func @transform_3(%arg0: i32) -> (i32, i32) {
    %c0_i32 = arith.constant 0 : i32
    %c0_i32_0 = arith.constant 0 : i32
    return %arg0, %c0_i32 : i32, i32
  }
}

</mosaic_0001>

<bundles_post_ra>
// kernel: tpu_custom_call.1
= control target key start
LH: loop header
LB: loop body
LE: loop exit
PB: predicated region body
PF: predicated region fallthrough
CT: control target
= control target key end

     0   :  { %8 = vsyncpa [#allocation3], 0  ;;  %s1158_s0 = inlined_call_operand.hbm [shape: f32[8,1024], index: 0, kind: input, shape index: {}]   ;;  %s1159_s1 = inlined_call_operand.hbm [shape: bf16[1024,128], index: 1, kind: input, shape index: {}]   ;;  %s1160_s2 = inlined_call_operand.vmem [shape: f32[1,128], index: 2, kind: input, shape index: {}]   ;;  %s1161_s3 = inlined_call_operand.hbm [shape: f32[8,128], index: 3, kind: output, shape index: {}]  }
   0x1   :  { %9 = vsyncpa [#allocation6], 0 }
   0x2   :  { %10 = vsyncpa [#allocation4], 0  ;;  %s16_s14 = sshll.u32 %s1158_s0, 4  ;;  %s1121_s15 = smov [#allocation2]   ;;  %s17_s14 = int_to_ptr.hbm [resolvable:$true] %s16_s14 }
   0x3   :  { %s18_s16 = sshll.u32 %s1121_s15, 4  ;;  %s26_s19 = sshll.u32 %s1159_s1, 4  ;;  %s19_s16 = int_to_ptr.vmem [resolvable:$true] %s18_s16  ;;  %s27_s19 = int_to_ptr.hbm [resolvable:$true] %s26_s19 }
   0x4   :  { %21 = dma.hbm_to_vmem [thread:$0]  %s17_s14, 1024, %s19_s16, [#allocation3]  }
   0x5   :  { %s1122_s20 = smov [#allocation5]   ;;  %s1123_s22 = smov 64  }
   0x6   :  { %s28_s21 = sshll.u32 %s1122_s20, 4  ;;  %s1124_s23 = smov 4   ;;  %s29_s21 = int_to_ptr.vmem [resolvable:$true] %s28_s21 }
   0x7   :  { %34 = dma.hbm_to_vmem [thread:$0]  %s27_s19, 8192, %s29_s21, [#allocation6], %s1123_s22, %s1123_s22, %s1124_s23  }
   0x8   :  { %1115 = dma.done.wait [#allocation3], 1024  }
   0x9   :  { %1116 = vsyncadd [#allocation3], 4294966272 }
   0xa   :  { %1117 = dma.done.wait [#allocation6], 8192  }
   0xb   :  { %1118 = vsyncadd [#allocation6], 4294959104  ;;  %v978_v0 = vld [vmem:[#allocation5 + $0x38] sm:$0xff]  ;;  %v977_v4 = vld [vmem:[#allocation5 + $0x30] sm:$0xff]  ;;  %s704_s27 = sshll.u32 %s1161_s3, 4  ;;  %s705_s27 = int_to_ptr.hbm [resolvable:$true] %s704_s27 }
   0xc   :  { %v986_v1 = vld [vmem:[#allocation5 + $0x78] sm:$0xff]  ;;  %577 = vmatpush.bf16.msra.mxu0 %v978_v0  ;;  %v985_v5 = vld [vmem:[#allocation5 + $0x70] sm:$0xff]  ;;  %v976_v8 = vld [vmem:[#allocation5 + $0x28] sm:$0xff] }
   0xd   :  { %v994_v2 = vld [vmem:[#allocation5 + $0xb8] sm:$0xff]  ;;  %590 = vmatpush.bf16.msra.mxu1 %v986_v1  ;;  %v993_v6 = vld [vmem:[#allocation5 + $0xb0] sm:$0xff]  ;;  %v984_v9 = vld [vmem:[#allocation5 + $0x68] sm:$0xff] }
   0xe   :  { %v1002_v3 = vld [vmem:[#allocation5 + $0xf8] sm:$0xff]  ;;  %603 = vmatpush.bf16.msra.mxu2 %v994_v2  ;;  %v1001_v7 = vld [vmem:[#allocation5 + $0xf0] sm:$0xff]  ;;  %v992_v10 = vld [vmem:[#allocation5 + $0xa8] sm:$0xff] }
   0xf   :  { %616 = vmatpush.bf16.msra.mxu3 %v1002_v3  ;;  %v1000_v11 = vld [vmem:[#allocation5 + $0xe8] sm:$0xff]  ;;  %v975_v12 = vld [vmem:[#allocation5 + $0x20] sm:$0xff]  ;;  %v974_v16 = vld [vmem:[#allocation5 + $0x18] sm:$0xff] }
  0x10   :  { %578 = vmatpush.bf16.msra.mxu0 %v977_v4  ;;  %v983_v13 = vld [vmem:[#allocation5 + $0x60] sm:$0xff]  ;;  %v982_v17 = vld [vmem:[#allocation5 + $0x58] sm:$0xff]  ;;  %v973_v20 = vld [vmem:[#allocation5 + $0x10] sm:$0xff] }
  0x11   :  { %591 = vmatpush.bf16.msra.mxu1 %v985_v5  ;;  %v991_v14 = vld [vmem:[#allocation5 + $0xa0] sm:$0xff]  ;;  %v990_v18 = vld [vmem:[#allocation5 + $0x98] sm:$0xff]  ;;  %v981_v21 = vld [vmem:[#allocation5 + $0x50] sm:$0xff] }
  0x12   :  { %604 = vmatpush.bf16.msra.mxu2 %v993_v6  ;;  %v999_v15 = vld [vmem:[#allocation5 + $0xe0] sm:$0xff]  ;;  %v998_v19 = vld [vmem:[#allocation5 + $0xd8] sm:$0xff]  ;;  %v989_v22 = vld [vmem:[#allocation5 + $0x90] sm:$0xff] }
  0x13   :  { %617 = vmatpush.bf16.msra.mxu3 %v1001_v7  ;;  %v997_v23 = vld [vmem:[#allocation5 + $0xd0] sm:$0xff]  ;;  %v972_v24 = vld [vmem:[#allocation5 + $0x8] sm:$0xff]  ;;  %v971_v28 = vld [vmem:[#allocation5] sm:$0xff] }
  0x14   :  { %579 = vmatpush.bf16.msra.mxu0 %v976_v8  ;;  %v980_v25 = vld [vmem:[#allocation5 + $0x48] sm:$0xff]  ;;  %v979_v29 = vld [vmem:[#allocation5 + $0x40] sm:$0xff]  ;;  %v1010_v32 = vld [vmem:[#allocation5 + $0x138] sm:$0xff] }
  0x15   :  { %592 = vmatpush.bf16.msra.mxu1 %v984_v9  ;;  %v988_v26 = vld [vmem:[#allocation5 + $0x88] sm:$0xff]  ;;  %v987_v30 = vld [vmem:[#allocation5 + $0x80] sm:$0xff]  ;;  %v47_v33 = vld [vmem:[#allocation2 + $0x10] sm:$0xff] }
  0x16   :  { %605 = vmatpush.bf16.msra.mxu2 %v992_v10  ;;  %v996_v27 = vld [vmem:[#allocation5 + $0xc8] sm:$0xff]  ;;  %v995_v31 = vld [vmem:[#allocation5 + $0xc0] sm:$0xff]  ;;  %v1018_v35 = vld [vmem:[#allocation5 + $0x178] sm:$0xff]  ;;  %v55_v40 = vpack.c.bf16 %v47_v33, %v47_v33 }
  0x17   :  { %618 = vmatpush.bf16.msra.mxu3 %v1000_v11  ;;  %v45_v34 = vld [vmem:[#allocation2] sm:$0xff]  ;;  %v48_v36 = vld [vmem:[#allocation2 + $0x18] sm:$0xff]  ;;  %v46_v37 = vld [vmem:[#allocation2 + $0x8] sm:$0xff] }
  0x18   :  { %580 = vmatpush.bf16.msra.mxu0 %v975_v12  ;;  %v1026_v38 = vld [vmem:[#allocation5 + $0x1b8] sm:$0xff]  ;;  %v53_v41 = vpack.c.bf16 %v45_v34, %v45_v34  ;;  %v56_v42 = vpack.c.bf16 %v48_v36, %v48_v36  ;;  %v54_v43 = vpack.c.bf16 %v46_v37, %v46_v37  ;;  %v1009_v44 = vld [vmem:[#allocation5 + $0x130] sm:$0xff]  ;;  %v1008_v48 = vld [vmem:[#allocation5 + $0x128] sm:$0xff] }
  0x19   :  { %593 = vmatpush.bf16.msra.mxu1 %v983_v13  ;;  %v1034_v39 = vld [vmem:[#allocation5 + $0x1f8] sm:$0xff]  ;;  %v1017_v45 = vld [vmem:[#allocation5 + $0x170] sm:$0xff]  ;;  %v1016_v49 = vld [vmem:[#allocation5 + $0x168] sm:$0xff] }
  0x1a   :  { %606 = vmatpush.bf16.msra.mxu2 %v991_v14  ;;  %v1025_v46 = vld [vmem:[#allocation5 + $0x1b0] sm:$0xff]  ;;  %v1024_v50 = vld [vmem:[#allocation5 + $0x1a8] sm:$0xff]  ;;  %v1007_v52 = vld [vmem:[#allocation5 + $0x120] sm:$0xff] }
  0x1b   :  { %619 = vmatpush.bf16.msra.mxu3 %v999_v15  ;;  %v1033_v47 = vld [vmem:[#allocation5 + $0x1f0] sm:$0xff]  ;;  %v1032_v51 = vld [vmem:[#allocation5 + $0x1e8] sm:$0xff]  ;;  %v1015_v53 = vld [vmem:[#allocation5 + $0x160] sm:$0xff] }
  0x1c   :  { %581 = vmatpush.bf16.msra.mxu0 %v974_v16  ;;  %v1023_v54 = vld [vmem:[#allocation5 + $0x1a0] sm:$0xff]  ;;  %v1006_v56 = vld [vmem:[#allocation5 + $0x118] sm:$0xff]  ;;  %v1005_v60 = vld [vmem:[#allocation5 + $0x110] sm:$0xff] }
  0x1d   :  { %594 = vmatpush.bf16.msra.mxu1 %v982_v17  ;;  %v1031_v55 = vld [vmem:[#allocation5 + $0x1e0] sm:$0xff]  ;;  %v1014_v57 = vld [vmem:[#allocation5 + $0x158] sm:$0xff]  ;;  %v1013_v61 = vld [vmem:[#allocation5 + $0x150] sm:$0xff] }
  0x1e   :  { %607 = vmatpush.bf16.msra.mxu2 %v990_v18  ;;  %v1022_v58 = vld [vmem:[#allocation5 + $0x198] sm:$0xff]  ;;  %v1021_v62 = vld [vmem:[#allocation5 + $0x190] sm:$0xff]  ;;  %v1004_v0 = vld [vmem:[#allocation5 + $0x108] sm:$0xff] }
  0x1f   :  { %620 = vmatpush.bf16.msra.mxu3 %v998_v19  ;;  %v1030_v59 = vld [vmem:[#allocation5 + $0x1d8] sm:$0xff]  ;;  %v1029_v63 = vld [vmem:[#allocation5 + $0x1d0] sm:$0xff]  ;;  %v1012_v1 = vld [vmem:[#allocation5 + $0x148] sm:$0xff] }
  0x20   :  { %582 = vmatpush.bf16.msra.mxu0 %v973_v20  ;;  %v1020_v2 = vld [vmem:[#allocation5 + $0x188] sm:$0xff]  ;;  %v1003_v4 = vld [vmem:[#allocation5 + $0x100] sm:$0xff]  ;;  %v51_v10 = vld [vmem:[#allocation2 + $0x30] sm:$0xff] }
  0x21   :  { %595 = vmatpush.bf16.msra.mxu1 %v981_v21  ;;  %v1028_v3 = vld [vmem:[#allocation5 + $0x1c8] sm:$0xff]  ;;  %v1011_v5 = vld [vmem:[#allocation5 + $0x140] sm:$0xff]  ;;  %v52_v11 = vld [vmem:[#allocation2 + $0x38] sm:$0xff]  ;;  %v59_v14 = vpack.c.bf16 %v51_v10, %v51_v10 }
  0x22   :  { %608 = vmatpush.bf16.msra.mxu2 %v989_v22  ;;  %v1019_v6 = vld [vmem:[#allocation5 + $0x180] sm:$0xff]  ;;  %v50_v8 = vld [vmem:[#allocation2 + $0x28] sm:$0xff]  ;;  %v60_v15 = vpack.c.bf16 %v52_v11, %v52_v11 }
  0x23   :  { %621 = vmatpush.bf16.msra.mxu3 %v997_v23  ;;  %v49_v7 = vld [vmem:[#allocation2 + $0x20] sm:$0xff]  ;;  %v58_v13 = vpack.c.bf16 %v50_v8, %v50_v8 }
  0x24   :  { %583 = vmatpush.bf16.msra.mxu0 %v972_v24  ;;  %v1027_v9 = vld [vmem:[#allocation5 + $0x1c0] sm:$0xff]  ;;  %v57_v12 = vpack.c.bf16 %v49_v7, %v49_v7 }
  0x25   :  { %596 = vmatpush.bf16.msra.mxu1 %v980_v25  ;;  %v1040_v22 = vld [vmem:[%s1160_s2] ss:$0 sm:$0xff]  ;;  %s1125_s2 = smov [#allocation7]  }
  0x26   :  { %609 = vmatpush.bf16.msra.mxu2 %v988_v26  ;;  %s702_s24 = sshll.u32 %s1125_s2, 4  ;;  %s703_s24 = int_to_ptr.vmem [resolvable:$true] %s702_s24 }
  0x27   :  { %622 = vmatpush.bf16.msra.mxu3 %v996_v27 }
  0x28   :  { %584 = vmatpush.bf16.msra.mxu0 %v971_v28 }
  0x29   :  { %597 = vmatpush.bf16.msra.mxu1 %v979_v29 }
  0x2a   :  { %610 = vmatpush.bf16.msra.mxu2 %v987_v30 }
  0x2b   :  { %623 = vmatpush.bf16.msra.mxu3 %v995_v31  ;;  %585 = vmatmul.bf16.vlgmr.msra.gmra.mxu0 %v53_v41 }
  0x2c   :  { %629 = vmatpush.bf16.msrb.mxu0 %v1010_v32  ;;  %598 = vmatmul.bf16.vlgmr.msra.gmra.mxu1 %v54_v43 }
  0x2d   :  { %642 = vmatpush.bf16.msrb.mxu1 %v1018_v35  ;;  %611 = vmatmul.bf16.vlgmr.msra.gmra.mxu2 %v55_v40 }
  0x2e   :  { %655 = vmatpush.bf16.msrb.mxu2 %v1026_v38  ;;  %624 = vmatmul.bf16.vlgmr.msra.gmra.mxu3 %v56_v42 }
  0x2f   :  { %668 = vmatpush.bf16.msrb.mxu3 %v1034_v39 }
  0x30   :  { %630 = vmatpush.bf16.msrb.mxu0 %v1009_v44 }
  0x31   :  { %643 = vmatpush.bf16.msrb.mxu1 %v1017_v45 }
  0x32   :  { %656 = vmatpush.bf16.msrb.mxu2 %v1025_v46 }
  0x33   :  { %669 = vmatpush.bf16.msrb.mxu3 %v1033_v47 }
  0x34   :  { %631 = vmatpush.bf16.msrb.mxu0 %v1008_v48 }
  0x35   :  { %644 = vmatpush.bf16.msrb.mxu1 %v1016_v49 }
  0x36   :  { %657 = vmatpush.bf16.msrb.mxu2 %v1024_v50 }
  0x37   :  { %670 = vmatpush.bf16.msrb.mxu3 %v1032_v51 }
  0x38   :  { %632 = vmatpush.bf16.msrb.mxu0 %v1007_v52 }
  0x39   :  { %645 = vmatpush.bf16.msrb.mxu1 %v1015_v53 }
  0x3a   :  { %658 = vmatpush.bf16.msrb.mxu2 %v1023_v54 }
  0x3b   :  { %671 = vmatpush.bf16.msrb.mxu3 %v1031_v55 }
  0x3c   :  { %633 = vmatpush.bf16.msrb.mxu0 %v1006_v56 }
  0x3d   :  { %646 = vmatpush.bf16.msrb.mxu1 %v1014_v57 }
  0x3e   :  { %659 = vmatpush.bf16.msrb.mxu2 %v1022_v58 }
  0x3f   :  { %672 = vmatpush.bf16.msrb.mxu3 %v1030_v59 }
  0x40   :  { %634 = vmatpush.bf16.msrb.mxu0 %v1005_v60 }
  0x41   :  { %647 = vmatpush.bf16.msrb.mxu1 %v1013_v61 }
  0x42   :  { %660 = vmatpush.bf16.msrb.mxu2 %v1021_v62 }
  0x43   :  { %673 = vmatpush.bf16.msrb.mxu3 %v1029_v63 }
  0x44   :  { %635 = vmatpush.bf16.msrb.mxu0 %v1004_v0 }
  0x45   :  { %648 = vmatpush.bf16.msrb.mxu1 %v1012_v1 }
  0x46   :  { %661 = vmatpush.bf16.msrb.mxu2 %v1020_v2 }
  0x47   :  { %674 = vmatpush.bf16.msrb.mxu3 %v1028_v3 }
  0x48   :  { %636 = vmatpush.bf16.msrb.mxu0 %v1003_v4 }
  0x49   :  { %649 = vmatpush.bf16.msrb.mxu1 %v1011_v5 }
  0x4a   :  { %662 = vmatpush.bf16.msrb.mxu2 %v1019_v6 }
  0x4b   :  { %675 = vmatpush.bf16.msrb.mxu3 %v1027_v9  ;;  %637 = vmatmul.bf16.vlgmr.msrb.gmra.mxu0 %v57_v12 }
  0x4c   :  { %650 = vmatmul.bf16.vlgmr.msrb.gmra.mxu1 %v58_v13 }
  0x4d   :  { %663 = vmatmul.bf16.vlgmr.msrb.gmra.mxu2 %v59_v14 }
  0x4e   :  { %676 = vmatmul.bf16.vlgmr.msrb.gmra.mxu3 %v60_v15 }
  0xa8   :  { %v586_v16 = vpop.f32.mrf.mxu0 }
  0xa9   :  { %v599_v17 = vpop.f32.mrf.mxu1  ;;  %v587_v25 = vadd.f32 %v1040_v22, %v586_v16 }
  0xab   :  { %v600_v26 = vadd.f32 %v599_v17, %v587_v25 }
  0xb0   :  { %v612_v18 = vpop.f32.mrf.mxu2  ;;  %v588_v20 = vpop.f32.mrf.mxu0 }
  0xb1   :  { %v625_v19 = vpop.f32.mrf.mxu3  ;;  %v601_v21 = vpop.f32.mrf.mxu1  ;;  %v613_v27 = vadd.f32 %v612_v18, %v600_v26 }
  0xb3   :  { %v626_v28 = vadd.f32 %v625_v19, %v613_v27 }
  0xb8   :  { %v614_v23 = vpop.f32.mrf.mxu2 }
  0xb9   :  { %v627_v24 = vpop.f32.mrf.mxu3 }
  0xc8   :  { %v638_v29 = vpop.f32.mrf.mxu0 }
  0xc9   :  { %v651_v30 = vpop.f32.mrf.mxu1  ;;  %v639_v31 = vadd.f32 %v638_v29, %v626_v28 }
  0xcb   :  { %v652_v32 = vadd.f32 %v651_v30, %v639_v31 }
  0xd0   :  { %v664_v33 = vpop.f32.mrf.mxu2  ;;  %v640_v36 = vpop.f32.mrf.mxu0 }
  0xd1   :  { %v677_v34 = vpop.f32.mrf.mxu3  ;;  %v665_v35 = vadd.f32 %v664_v33, %v652_v32  ;;  %v653_v37 = vpop.f32.mrf.mxu1 }
  0xd3   :  { %v678_v38 = vadd.f32 %v677_v34, %v665_v35 }
  0xd5   :  { %v681_v39 = vmul.f32 %v678_v38, %v678_v38 }
  0xd7   :  { %682 = vadd.xlane.f32.xlu0 %v681_v39 }
  0xd8   :  { %v666_v40 = vpop.f32.mrf.mxu2 }
  0xd9   :  { %v679_v41 = vpop.f32.mrf.mxu3 }
 0x14a   :  { %v683_v42 = vpop.xlane.xlu0 %682 }
 0x14b   :  { %v684_v43 = vmax.f32 %v683_v42, 1e-24 }
 0x14d   :  { %1041 = vrsqrt.f32 %v684_v43  ;;  %vm691_vm1 = vweird.f32 %v684_v43 }
 0x153   :  { %v1042_v44 = vpop.eup %1041 }
 0x154   :  { %v686_v45 = vmul.f32 %v1042_v44, %v684_v43  ;;  %vm692_vm0 = vweird.f32 %v1042_v44 }
 0x155   :  { %vm693_vm2 = vmor %vm691_vm1, %vm692_vm0 }
 0x156   :  { %v687_v46 = vmul.f32 %v1042_v44, %v686_v45 }
 0x158   :  { %v688_v47 = vmul.f32 0.5, %v687_v46 }
 0x15a   :  { %v689_v48 = vsub.f32 1.5, %v688_v47 }
 0x15c   :  { %v690_v49 = vmul.f32 %v1042_v44, %v689_v48 }
 0x15e   :  { %v694_v50 = vsel %vm693_vm2, %v1042_v44, %v690_v49 }
 0x15f   :  { %v695_v51 = vmul.f32 %v694_v50, %v678_v38 }
 0x161   :  { %696 = vst [vmem:[#allocation7] sm:$0xff] %v695_v51 }
 0x162   :  { %707 = dma.vmem_to_hbm [thread:$0]  %s703_s24, 128, %s705_s27, [#allocation4]  }
 0x163   :  { %1119 = dma.done.wait [#allocation4], 128  }
 0x164   :  { %1120 = vsyncadd [#allocation4], 4294967168 }
 0x165   :  { %712 = vsyncpa [#allocation3], 1 }
 0x166   :  { %713 = vsyncpa [#allocation6], 1 }
 0x167   :  { %714 = vsyncpa [#allocation4], 1 }

</bundles_post_ra>
